<compile_context>
chip_gen: v6e
topology: v6e:2x2x1
jax: 0.10.0
libtpu: 0.0.40
codegen_flags: <defaults>
</compile_context>

<pallas_src>
import jax
import jax.numpy as jnp
from jax.experimental import pallas as pl
from jax.experimental.pallas import tpu as pltpu


WIDTH = 1024                          # lane-dense last dim (one f32 vreg = 8x128 = 1024 elems)
MAX_TILE_ROWS = 2048                  # (2048, 1024) f32 block = 8 MiB per buffer
SMALL_N = 8 * WIDTH                   # below this, plain jnp beats launch + per-step overhead
VMEM_LIMIT_BYTES = 48 * 1024 * 1024   # in+out double-buffered = 32 MiB; 48 MiB fits v7x's 64 MiB VMEM


def logistic_kernel(x_ref, w_ref, b_ref, o_ref):
    # x_ref / o_ref: (tm, WIDTH) f32 VMEM tiles.  w_ref / b_ref: (1,) f32 scalars in SMEM.
    # sigmoid(z) = 0.5 * tanh(0.5 * z) + 0.5  -> one EUP op per vreg (no exp + divide),
    # guaranteeing the kernel stays HBM-bound on all of v5e / v6e / v7x.
    half_w = 0.5 * w_ref[0]           # scalar-path math (SMEM reads)
    half_b = 0.5 * b_ref[0]
    z = x_ref[...] * half_w + half_b
    o_ref[...] = 0.5 * jnp.tanh(z) + 0.5


def _run_kernel_2d(x2, w_s, b_s):
    """x2: (rows, WIDTH) f32 -> sigmoid(x2 * w + b), via the tiled Pallas kernel."""
    rows = x2.shape[0]
    tm = rows if rows <= MAX_TILE_ROWS else MAX_TILE_ROWS
    grid = (pl.cdiv(rows, tm),)       # last row-block (if partial) is masked by Pallas
    return pl.pallas_call(
        logistic_kernel,
        out_shape=jax.ShapeDtypeStruct((rows, WIDTH), x2.dtype),
        grid=grid,
        in_specs=[
            pl.BlockSpec((tm, WIDTH), lambda i: (i, 0)),
            pl.BlockSpec(memory_space=pltpu.MemorySpace.SMEM),
            pl.BlockSpec(memory_space=pltpu.MemorySpace.SMEM),
        ],
        out_specs=pl.BlockSpec((tm, WIDTH), lambda i: (i, 0)),
        compiler_params=pltpu.CompilerParams(
            dimension_semantics=("parallel",),
            vmem_limit_bytes=VMEM_LIMIT_BYTES,
        ),
    )(x2, w_s, b_s)


def logistic_regression(x, weight, bias):
    """x: (..., 1) f32, weight: (1, 1) f32, bias: (1,) f32 -> sigmoid(x @ W^T + b), same shape as x."""
    orig_shape = x.shape
    x_flat = x.reshape(-1)            # (..., 1) -> (N,): layout-preserving, no copy
    n = x_flat.shape[0]

    w_s = weight.reshape(-1).astype(x.dtype)   # (1,) scalar for SMEM
    b_s = bias.reshape(-1).astype(x.dtype)     # (1,) scalar for SMEM
    w = w_s[0]
    b = b_s[0]

    # Small-input fast path: kernel launch + per-step overhead would dominate.
    if n < SMALL_N:
        return jax.nn.sigmoid(x_flat * w + b).reshape(orig_shape)

    n_bulk = (n // WIDTH) * WIDTH     # WIDTH-aligned prefix handled by the kernel

    if n_bulk == n:
        # Aligned: zero wrapper-side copies (no pad, no slice, no concat).
        out2 = _run_kernel_2d(x_flat.reshape(n_bulk // WIDTH, WIDTH), w_s, b_s)
        return out2.reshape(orig_shape)

    # Unaligned: lane-dense bulk through the kernel, <WIDTH-element tail in plain jnp.
    bulk = x_flat[:n_bulk].reshape(n_bulk // WIDTH, WIDTH)
    out_bulk = _run_kernel_2d(bulk, w_s, b_s).reshape(-1)
    out_tail = jax.nn.sigmoid(x_flat[n_bulk:] * w + b)
    return jnp.concatenate([out_bulk, out_tail]).reshape(orig_shape)


if __name__ == "__main__":
    key = jax.random.PRNGKey(0)
    kx_small, kx_aligned, kx_tail, kw, kb = jax.random.split(key, 5)

    # nn.Linear(1, 1): weight (1, 1), bias (1,), init U(-1, 1) (bound = 1/sqrt(in_features)).
    weight = jax.random.uniform(kw, (1, 1), jnp.float32, minval=-1.0, maxval=1.0)
    bias = jax.random.uniform(kb, (1,), jnp.float32, minval=-1.0, maxval=1.0)

    def reference(x):
        return jax.nn.sigmoid(x @ weight.T + bias)

    # 1) Tiny batch, matching the module's (batch, 1) convention -> jnp fast path.
    x_small = jax.random.normal(kx_small, (8, 1), jnp.float32)
    y_small = jax.block_until_ready(logistic_regression(x_small, weight, bias))
    assert y_small.shape == x_small.shape, "shape mismatch vs reference (small)"
    assert jnp.allclose(y_small, reference(x_small), atol=1e-6), "mismatch vs reference (small)"

    # 2) WIDTH-aligned batch -> Pallas kernel, no wrapper-side pad/slice copies.
    x_aligned = jax.random.normal(kx_aligned, (16 * WIDTH, 1), jnp.float32)
    y_aligned = jax.block_until_ready(logistic_regression(x_aligned, weight, bias))
    assert y_aligned.shape == x_aligned.shape, "shape mismatch vs reference (aligned)"
    assert jnp.allclose(y_aligned, reference(x_aligned), atol=1e-6), "mismatch vs reference (aligned)"

    # 3) Unaligned batch -> kernel on the aligned bulk + jnp tail.
    x_tail = jax.random.normal(kx_tail, (16 * WIDTH + 17, 1), jnp.float32)
    y_tail = jax.block_until_ready(logistic_regression(x_tail, weight, bias))
    assert y_tail.shape == x_tail.shape, "shape mismatch vs reference (unaligned)"
    assert jnp.allclose(y_tail, reference(x_tail), atol=1e-6), "mismatch vs reference (unaligned)"

    print("KERNEL_OK")
</pallas_src>

<mosaic_0001>
module attributes {stable_mosaic.version = 11 : i64} {
  func.func @logistic_kernel(%arg0: i32, %arg1: memref<16x1024xf32, #tpu.memory_space<vmem>>, %arg2: memref<1xf32, #tpu.memory_space<smem>>, %arg3: memref<1xf32, #tpu.memory_space<smem>>, %arg4: memref<16x1024xf32, #tpu.memory_space<vmem>>) attributes {dimension_semantics = [#tpu.dimension_semantics<parallel>], iteration_bounds = array<i64: 1>, scalar_prefetch = 0 : i64, scratch_operands = 0 : i64, tpu.core_type = #tpu.core_type<tc>, window_params = [{transform_indices = @transform_0, window_bounds = array<i64: 16, 1024>}, {transform_indices = @transform_1, window_bounds = array<i64: 1>}, {transform_indices = @transform_2, window_bounds = array<i64: 1>}, {transform_indices = @transform_3, window_bounds = array<i64: 16, 1024>}]} {
    %c0 = arith.constant 0 : index
    %0 = memref.load %arg2[%c0] : memref<1xf32, #tpu.memory_space<smem>>
    %cst = arith.constant 5.000000e-01 : f32
    %1 = arith.mulf %cst, %0 : f32
    %c0_0 = arith.constant 0 : index
    %2 = memref.load %arg3[%c0_0] : memref<1xf32, #tpu.memory_space<smem>>
    %cst_1 = arith.constant 5.000000e-01 : f32
    %3 = arith.mulf %cst_1, %2 : f32
    %c0_2 = arith.constant 0 : index
    %c0_3 = arith.constant 0 : index
    %4 = vector.load %arg1[%c0_2, %c0_3] : memref<16x1024xf32, #tpu.memory_space<vmem>>, vector<16x1024xf32>
    %5 = vector.broadcast %1 : f32 to vector<16x1024xf32>
    %6 = arith.mulf %4, %5 : vector<16x1024xf32>
    %7 = vector.broadcast %3 : f32 to vector<16x1024xf32>
    %8 = arith.addf %6, %7 : vector<16x1024xf32>
    %9 = math.tanh %8 : vector<16x1024xf32>
    %cst_4 = arith.constant 5.000000e-01 : f32
    %10 = vector.broadcast %cst_4 : f32 to vector<16x1024xf32>
    %11 = arith.mulf %10, %9 : vector<16x1024xf32>
    %cst_5 = arith.constant 5.000000e-01 : f32
    %12 = vector.broadcast %cst_5 : f32 to vector<16x1024xf32>
    %13 = arith.addf %11, %12 : vector<16x1024xf32>
    %c0_6 = arith.constant 0 : index
    %c0_7 = arith.constant 0 : index
    %14 = vector.load %arg4[%c0_6, %c0_7] : memref<16x1024xf32, #tpu.memory_space<vmem>>, vector<16x1024xf32>
    tpu.vector_store %arg4[%c0_6, %c0_7], %13 {strides = array<i32>} : memref<16x1024xf32, #tpu.memory_space<vmem>>, vector<16x1024xf32>,
    return
  }
  func.func @transform_0(%arg0: i32) -> (i32, i32) {
    %c0_i32 = arith.constant 0 : i32
    %c0_i32_0 = arith.constant 0 : i32
    return %arg0, %c0_i32 : i32, i32
  }
  func.func @transform_1(%arg0: i32) -> i32 {
    %c0_i32 = arith.constant 0 : i32
    %c0_i32_0 = arith.constant 0 : i32
    return %c0_i32 : i32
  }
  func.func @transform_2(%arg0: i32) -> i32 {
    %c0_i32 = arith.constant 0 : i32
    %c0_i32_0 = arith.constant 0 : i32
    return %c0_i32 : i32
  }
  func.func @transform_3(%arg0: i32) -> (i32, i32) {
    %c0_i32 = arith.constant 0 : i32
    %c0_i32_0 = arith.constant 0 : i32
    return %arg0, %c0_i32 : i32, i32
  }
}

</mosaic_0001>

<bundles_post_ra>
// kernel: tpu_custom_call.1
= control target key start
LH: loop header
LB: loop body
LE: loop exit
PB: predicated region body
PF: predicated region fallthrough
CT: control target
= control target key end

     0   :  { %10 = vsyncpa [#allocation5], 0  ;;  %s288_s0 = inlined_call_operand.hbm [shape: f32[16,1024], index: 0, kind: input, shape index: {}]   ;;  %s289_s1 = inlined_call_operand.<no memory space> [shape: f32[1], index: 1, kind: input, shape index: {}]   ;;  %s290_s2 = inlined_call_operand.<no memory space> [shape: f32[1], index: 2, kind: input, shape index: {}]   ;;  %s291_s3 = inlined_call_operand.hbm [shape: f32[16,1024], index: 3, kind: output, shape index: {}]  }
   0x1   :  { %11 = vsyncpa [#allocation6], 0  ;;  %s246_s12 = smov [#allocation4]  }
   0x2   :  { %s17_s13 = sshll.u32 %s246_s12, 4  ;;  %s18_s13 = int_to_ptr.vmem [resolvable:$true] %s17_s13 }
   0x3   :  { %s210_s14 = scalar_lea.vmem %s18_s13, 2048  ;;  %p215_p1 = scmp.lt.s32.totalorder %s18_s13, %s18_s13 }
   0x4   :  { %p211_p0 = scmp.ne.s32.totalorder %s18_s13, %s210_s14  ;;  %p216_p2 = scmp.lt.s32.totalorder %s210_s14, %s210_s14 }
   0x6   :  { %p217_p3 = por %p216_p2, %p215_p1 }
   0x8   :  { %p218_p4 = pnand %p217_p3, %p211_p0 }
   0xa   :  { %221 = shalt.err (!%p218_p4)
}
   0xb   :  { %s247_s15 = smov 1024   ;;  %s248_s16 = smov 64  }
   0xc   :  { %23 = dma.hbm_to_vmem [thread:$0]  %s288_s0, 2048, %s18_s13, [#allocation5], %s247_s15, %s247_s15, %s248_s16  }
   0xd   :  { %242 = dma.done.wait [#allocation5], 2048  }
   0xe   :  { %243 = vsyncadd [#allocation5], 4294965248  ;;  %s32_s21 = smul.f32 0.5, %s289_s1  ;;  %v35_v1 = vld [vmem:[#allocation4] sm:$0xff]  ;;  %v36_v3 = vld [vmem:[#allocation4 + $0x8] sm:$0xff]  ;;  %s249_s0 = smov [#allocation7]  }
   0xf   :  { %s34_s24 = smul.f32 0.5, %s290_s2  ;;  %v37_v4 = vld [vmem:[#allocation4 + $0x10] sm:$0xff]  ;;  %v38_v8 = vld [vmem:[#allocation4 + $0x18] sm:$0xff]  ;;  %v39_v9 = vld [vmem:[#allocation4 + $0x20] sm:$0xff]  ;;  %s154_s1 = sshll.u32 %s249_s0, 4  ;;  %s155_s1 = int_to_ptr.vmem [resolvable:$true] %s154_s1 }
  0x10   :  { %v51_v0 = vstv %s32_s21  ;;  %v40_v10 = vld [vmem:[#allocation4 + $0x28] sm:$0xff]  ;;  %v41_v14 = vld [vmem:[#allocation4 + $0x30] sm:$0xff]  ;;  %v42_v15 = vld [vmem:[#allocation4 + $0x38] sm:$0xff]  ;;  %s222_s2 = scalar_lea.vmem %s155_s1, 2048  ;;  %p227_p6 = scmp.lt.s32.totalorder %s155_s1, %s155_s1 }
  0x11   :  { %v68_v2 = vstv %s34_s24  ;;  %v52_v5 = vmul.f32 %v51_v0, %v35_v1  ;;  %v53_v6 = vmul.f32 %v51_v0, %v36_v3  ;;  %v54_v7 = vmul.f32 %v51_v0, %v37_v4  ;;  %v43_v16 = vld [vmem:[#allocation4 + $0x40] sm:$0xff]  ;;  %v44_v21 = vld [vmem:[#allocation4 + $0x48] sm:$0xff]  ;;  %v45_v24 = vld [vmem:[#allocation4 + $0x50] sm:$0xff]  ;;  %p223_p5 = scmp.ne.s32.totalorder %s155_s1, %s222_s2  ;;  %p228_p7 = scmp.lt.s32.totalorder %s222_s2, %s222_s2 }
  0x12   :  { %v55_v11 = vmul.f32 %v51_v0, %v38_v8  ;;  %v56_v12 = vmul.f32 %v51_v0, %v39_v9  ;;  %v57_v13 = vmul.f32 %v51_v0, %v40_v10  ;;  %v58_v20 = vmul.f32 %v51_v0, %v41_v14  ;;  %v46_v27 = vld [vmem:[#allocation4 + $0x58] sm:$0xff]  ;;  %v47_v30 = vld [vmem:[#allocation4 + $0x60] sm:$0xff]  ;;  %v48_v33 = vld [vmem:[#allocation4 + $0x68] sm:$0xff] }
  0x13   :  { %v69_v17 = vadd.f32 %v68_v2, %v52_v5  ;;  %v70_v18 = vadd.f32 %v68_v2, %v53_v6  ;;  %v71_v19 = vadd.f32 %v68_v2, %v54_v7  ;;  %v59_v23 = vmul.f32 %v51_v0, %v42_v15  ;;  %v49_v36 = vld [vmem:[#allocation4 + $0x70] sm:$0xff]  ;;  %v50_v39 = vld [vmem:[#allocation4 + $0x78] sm:$0xff]  ;;  %p229_p8 = por %p228_p7, %p227_p6 }
  0x14   :  { %v72_v22 = vadd.f32 %v68_v2, %v55_v11  ;;  %v73_v25 = vadd.f32 %v68_v2, %v56_v12  ;;  %v60_v26 = vmul.f32 %v51_v0, %v43_v16  ;;  %v74_v28 = vadd.f32 %v68_v2, %v57_v13 }
  0x15   :  { %170 = vtanh.f32 %v69_v17  ;;  %v61_v29 = vmul.f32 %v51_v0, %v44_v21  ;;  %v75_v31 = vadd.f32 %v68_v2, %v58_v20  ;;  %v62_v32 = vmul.f32 %v51_v0, %v45_v24  ;;  %p230_p9 = pnand %p229_p8, %p223_p5 }
  0x16   :  { %172 = vtanh.f32 %v70_v18  ;;  %v76_v34 = vadd.f32 %v68_v2, %v59_v23  ;;  %v63_v35 = vmul.f32 %v51_v0, %v46_v27  ;;  %v77_v37 = vadd.f32 %v68_v2, %v60_v26 }
  0x17   :  { %174 = vtanh.f32 %v71_v19  ;;  %v64_v38 = vmul.f32 %v51_v0, %v47_v30  ;;  %v78_v40 = vadd.f32 %v68_v2, %v61_v29  ;;  %v65_v41 = vmul.f32 %v51_v0, %v48_v33 }
  0x18   :  { %176 = vtanh.f32 %v72_v22  ;;  %v79_v42 = vadd.f32 %v68_v2, %v62_v32  ;;  %v66_v43 = vmul.f32 %v51_v0, %v49_v36  ;;  %v80_v44 = vadd.f32 %v68_v2, %v63_v35 }
  0x19   :  { %178 = vtanh.f32 %v73_v25  ;;  %v67_v45 = vmul.f32 %v51_v0, %v50_v39  ;;  %v81_v46 = vadd.f32 %v68_v2, %v64_v38  ;;  %v82_v47 = vadd.f32 %v68_v2, %v65_v41 }
  0x1a   :  { %180 = vtanh.f32 %v74_v28  ;;  %v83_v48 = vadd.f32 %v68_v2, %v66_v43 }
  0x1b   :  { %182 = vtanh.f32 %v75_v31  ;;  %v84_v49 = vadd.f32 %v68_v2, %v67_v45 }
  0x1c   :  { %184 = vtanh.f32 %v76_v34 }
  0x1d   :  { %186 = vtanh.f32 %v77_v37 }
  0x1e   :  { %188 = vtanh.f32 %v78_v40 }
  0x1f   :  { %190 = vtanh.f32 %v79_v42 }
  0x20   :  { %192 = vtanh.f32 %v80_v44 }
  0x21   :  { %194 = vtanh.f32 %v81_v46 }
  0x22   :  { %v171_v50 = vpop.eup %170  ;;  %196 = vtanh.f32 %v82_v47 }
  0x23   :  { %v173_v51 = vpop.eup %172  ;;  %v101_v52 = vmul.f32 0.5, %v171_v50  ;;  %198 = vtanh.f32 %v83_v48 }
  0x24   :  { %v175_v53 = vpop.eup %174  ;;  %v102_v54 = vmul.f32 0.5, %v173_v51  ;;  %200 = vtanh.f32 %v84_v49 }
  0x25   :  { %v177_v55 = vpop.eup %176  ;;  %v117_v56 = vadd.f32 0.5, %v101_v52  ;;  %v103_v57 = vmul.f32 0.5, %v175_v53 }
  0x26   :  { %v179_v58 = vpop.eup %178  ;;  %v118_v59 = vadd.f32 0.5, %v102_v54  ;;  %v104_v60 = vmul.f32 0.5, %v177_v55 }
  0x27   :  { %v181_v61 = vpop.eup %180  ;;  %133 = vst [vmem:[#allocation7] sm:$0xff] %v117_v56  ;;  %v119_v62 = vadd.f32 0.5, %v103_v57  ;;  %v105_v63 = vmul.f32 0.5, %v179_v58 }
  0x28   :  { %v183_v0 = vpop.eup %182  ;;  %134 = vst [vmem:[#allocation7 + $0x8] sm:$0xff] %v118_v59  ;;  %v120_v1 = vadd.f32 0.5, %v104_v60  ;;  %v106_v2 = vmul.f32 0.5, %v181_v61 }
  0x29   :  { %v185_v3 = vpop.eup %184  ;;  %135 = vst [vmem:[#allocation7 + $0x10] sm:$0xff] %v119_v62  ;;  %v121_v4 = vadd.f32 0.5, %v105_v63  ;;  %v107_v5 = vmul.f32 0.5, %v183_v0 }
  0x2a   :  { %v187_v6 = vpop.eup %186  ;;  %136 = vst [vmem:[#allocation7 + $0x18] sm:$0xff] %v120_v1  ;;  %v122_v7 = vadd.f32 0.5, %v106_v2  ;;  %v108_v8 = vmul.f32 0.5, %v185_v3 }
  0x2b   :  { %v189_v9 = vpop.eup %188  ;;  %137 = vst [vmem:[#allocation7 + $0x20] sm:$0xff] %v121_v4  ;;  %v123_v10 = vadd.f32 0.5, %v107_v5  ;;  %v109_v11 = vmul.f32 0.5, %v187_v6 }
  0x2c   :  { %v191_v12 = vpop.eup %190  ;;  %138 = vst [vmem:[#allocation7 + $0x28] sm:$0xff] %v122_v7  ;;  %v124_v13 = vadd.f32 0.5, %v108_v8  ;;  %v110_v14 = vmul.f32 0.5, %v189_v9 }
  0x2d   :  { %v193_v15 = vpop.eup %192  ;;  %139 = vst [vmem:[#allocation7 + $0x30] sm:$0xff] %v123_v10  ;;  %v125_v16 = vadd.f32 0.5, %v109_v11  ;;  %v111_v17 = vmul.f32 0.5, %v191_v12 }
  0x2e   :  { %v195_v18 = vpop.eup %194  ;;  %140 = vst [vmem:[#allocation7 + $0x38] sm:$0xff] %v124_v13  ;;  %v126_v19 = vadd.f32 0.5, %v110_v14  ;;  %v112_v20 = vmul.f32 0.5, %v193_v15 }
  0x2f   :  { %v197_v21 = vpop.eup %196  ;;  %141 = vst [vmem:[#allocation7 + $0x40] sm:$0xff] %v125_v16  ;;  %v127_v22 = vadd.f32 0.5, %v111_v17  ;;  %v113_v23 = vmul.f32 0.5, %v195_v18 }
  0x30   :  { %v199_v24 = vpop.eup %198  ;;  %142 = vst [vmem:[#allocation7 + $0x48] sm:$0xff] %v126_v19  ;;  %v128_v25 = vadd.f32 0.5, %v112_v20  ;;  %v114_v26 = vmul.f32 0.5, %v197_v21 }
  0x31   :  { %v201_v27 = vpop.eup %200  ;;  %143 = vst [vmem:[#allocation7 + $0x50] sm:$0xff] %v127_v22  ;;  %v129_v28 = vadd.f32 0.5, %v113_v23  ;;  %v115_v29 = vmul.f32 0.5, %v199_v24 }
  0x32   :  { %144 = vst [vmem:[#allocation7 + $0x58] sm:$0xff] %v128_v25  ;;  %v130_v30 = vadd.f32 0.5, %v114_v26  ;;  %v116_v31 = vmul.f32 0.5, %v201_v27 }
  0x33   :  { %145 = vst [vmem:[#allocation7 + $0x60] sm:$0xff] %v129_v28  ;;  %v131_v32 = vadd.f32 0.5, %v115_v29 }
  0x34   :  { %146 = vst [vmem:[#allocation7 + $0x68] sm:$0xff] %v130_v30  ;;  %v132_v33 = vadd.f32 0.5, %v116_v31 }
  0x35   :  { %147 = vst [vmem:[#allocation7 + $0x70] sm:$0xff] %v131_v32 }
  0x36   :  { %148 = vst [vmem:[#allocation7 + $0x78] sm:$0xff] %v132_v33 }
  0x37   :  { %233 = shalt.err (!%p230_p9)
}
  0x38   :  { %160 = dma.vmem_to_hbm [thread:$0]  %s155_s1, 2048, %s291_s3, [#allocation6], %s247_s15, %s247_s15, %s248_s16  }
  0x39   :  { %244 = dma.done.wait [#allocation6], 2048  }
  0x3a   :  { %245 = vsyncadd [#allocation6], 4294965248 }
  0x3b   :  { %164 = vsyncpa [#allocation5], 1 }
  0x3c   :  { %165 = vsyncpa [#allocation6], 1 }

</bundles_post_ra>
